<compile_context>
chip_gen: v7x
topology: tpu7x:2x2x1
jax: 0.10.0
libtpu: 0.0.40
codegen_flags: <defaults>
</compile_context>

<pallas_src>
import math

import jax
import jax.numpy as jnp
from jax.experimental import pallas as pl
from jax.experimental.pallas import tpu as pltpu

ALPHA = 0.2          # LeakyReLU negative slope (the module's `alpha`)
NEG_BIG = -9e15      # mask fill value, matches -9000000000000000.0


def _round_up(v, m):
    return ((v + m - 1) // m) * m


def _pick_tile(n, candidates):
    for c in candidates:
        if n % c == 0:
            return c
    return n  # fall back to the full (untiled) axis


def _divisors_desc(n):
    return [d for d in range(n, 0, -1) if n % d == 0]


def _vmem_config():
    """Returns (vmem_limit_bytes, per-step tile budget), conservative for v5e/v6e/v7x."""
    cap = None
    try:
        cap = getattr(pltpu.get_tpu_info(), "vmem_capacity_bytes", None)
    except Exception:
        cap = None
    if not cap:
        cap = 64 << 20                      # assume v7x-sized VMEM if unknown
    limit = max(32 << 20, min(int(cap * 0.6), 64 << 20))
    return int(limit), (int(limit) * 3) // 4


# ------------- stage 1: h = x @ W (bf16 MXU, f32 acc), plus e_src / e_dst -------------
def _h_kernel(x_ref, w_ref, a_ref, h_ref, esrc_ref, edst_ref, acc_ref):
    k = pl.program_id(1)

    @pl.when(k == 0)
    def _():
        acc_ref[...] = jnp.zeros_like(acc_ref)

    acc_ref[...] += jnp.dot(x_ref[...].astype(jnp.bfloat16), w_ref[...],
                            preferred_element_type=jnp.float32)

    @pl.when(k == pl.num_programs(1) - 1)
    def _():
        h = acc_ref[...]                                  # (tm, f_pad) f32
        h_ref[...] = h.astype(h_ref.dtype)                # lane-dense bf16 store
        a = a_ref[...]                                    # (2, f_pad) f32
        # per-row attention scores, computed once while h is resident in VMEM
        esrc_ref[...] = jnp.sum(h * a[0:1, :], axis=-1, keepdims=True)
        edst_ref[...] = jnp.sum(h * a[1:2, :], axis=-1, keepdims=True)


def _stage1_tiles(rows, f_in, f_pad, budget):
    # K (f_in) tiling only when it is large and 128-aligned; otherwise one block.
    if f_in % 128 == 0 and f_in > 512:
        tkf = _pick_tile(f_in, (512, 256, 128))
    else:
        tkf = f_in

    def fits(tm):
        step = 2 * (tm * tkf * 4 + tkf * f_pad * 2 + tm * f_pad * 2 + 2 * tm * 4)
        step += tm * f_pad * 4                            # f32 accumulator scratch
        return step <= budget

    cands = [c for c in (1024, 512, 256, 128, 64, 32, 16, 8) if rows % c == 0]
    if not cands:
        cands = [rows]
    tm = next((c for c in cands if fits(c)), cands[-1])
    # v7x megacore: prefer >=2 steps on the "parallel" row axis when possible.
    if rows // tm < 2:
        tm = next((c for c in cands if rows // c >= 2 and fits(c)), tm)
    return tm, tkf


# -------- stage 2: flash-style masked attention + ELU (online softmax, batched block) --------
def _attn_kernel(hk_ref, es_ref, ed_ref, adj_ref, o_ref, m_sc, l_sc, acc_sc):
    ki = pl.program_id(2)

    @pl.when(ki == 0)
    def _():
        m_sc[...] = jnp.full(m_sc.shape, -jnp.inf, m_sc.dtype)
        l_sc[...] = jnp.zeros_like(l_sc)
        acc_sc[...] = jnp.zeros_like(acc_sc)

    # e[b,i,j] = leakyrelu(e_src[b,i] + e_dst[b,j]); scores precomputed in stage 1.
    e = es_ref[...] + ed_ref[...]                         # (bb,tq,1)+(bb,1,tk) -> (bb,tq,tk)
    e = jnp.maximum(e, ALPHA * e)                         # LeakyReLU, 2 VPU ops

    # int8 adjacency compared directly (no int8->f32 convert of the tile).
    s = jnp.where((adj_ref[...] > 0)[None, :, :], e, NEG_BIG)

    # online softmax update
    m_prev = m_sc[...]
    m_new = jnp.maximum(m_prev, jnp.max(s, axis=-1, keepdims=True))
    corr = jnp.exp(m_prev - m_new)
    p = jnp.exp(s - m_new)
    l_sc[...] = corr * l_sc[...] + jnp.sum(p, axis=-1, keepdims=True)
    acc_sc[...] = corr * acc_sc[...] + jnp.einsum(
        "bqk,bkd->bqd", p.astype(jnp.bfloat16), hk_ref[...],
        preferred_element_type=jnp.float32)
    m_sc[...] = m_new

    @pl.when(ki == pl.num_programs(2) - 1)
    def _():
        h_prime = acc_sc[...] * pl.reciprocal(l_sc[...], approx=True)
        # ELU(alpha=1); exp only sees clamped (<=0) values -> no overflow.
        o_ref[...] = jnp.where(
            h_prime > 0, h_prime,
            jnp.exp(jnp.minimum(h_prime, 0.0)) - 1.0).astype(o_ref.dtype)


def _stage2_fits(bb, tq, tk, f_pad, budget):
    step = 2 * (bb * tk * f_pad * 2           # h keys (bf16), double-buffered
                + bb * tq * 4 + bb * tk * 4   # e_src / e_dst blocks
                + tq * tk                     # int8 adjacency tile
                + bb * tq * f_pad * 4)        # f32 output block
    step += bb * tq * f_pad * 4 + 2 * bb * tq * 4   # acc / m / l scratch
    step += 2 * bb * tq * tk * 4                    # score & p temporaries
    return step <= budget


def _stage2_tiles(bs, n_pad, f_pad, budget):
    cands = (256, 128) if f_pad >= 1024 else (512, 256, 128)
    tq = tk = _pick_tile(n_pad, cands)        # n_pad % 128 == 0 -> always tiled
    while True:
        bb = next((d for d in _divisors_desc(bs)
                   if _stage2_fits(d, tq, tk, f_pad, budget)), None)
        if bb is not None:
            # v7x megacore: keep >=2 units of "parallel" grid work when cheap
            # (adj is tiny in that regime, so shrinking bb costs ~nothing).
            if (bs // bb) * (n_pad // tq) < 2:
                bb2 = next((d for d in _divisors_desc(bs)
                            if bs // d >= 2 and _stage2_fits(d, tq, tk, f_pad, budget)), None)
                if bb2 is not None:
                    bb = bb2
            return bb, tq, tk
        if tk > 128:
            tk //= 2
        elif tq > 128:
            tq //= 2
        else:
            return 1, tq, tk


def gat_forward(x, adj, W, a):
    """x: (bs, N, F_in) f32, adj: (N, N), W: (F_in, F_out), a: (2*F_out, 1)."""
    bs, N, f_in = x.shape
    f_out = W.shape[1]
    f_pad = _round_up(f_out, 128)             # lane-dense h / output
    n_pad = _round_up(N, 128)                 # always-tiled attention axis
    vmem_limit, budget = _vmem_config()

    # One-time parameter / input packing.  Zero padding does not change the math:
    # padded h columns are 0, padded `a` entries are 0, padded adj columns are
    # masked out of the softmax, padded query rows / feature columns are sliced.
    w_pad = jnp.pad(W, ((0, 0), (0, f_pad - f_out))).astype(jnp.bfloat16)
    a_pair = jnp.pad(a.reshape(2, f_out), ((0, 0), (0, f_pad - f_out))).astype(jnp.float32)
    adj_i8 = jnp.pad((adj > 0).astype(jnp.int8), ((0, n_pad - N), (0, n_pad - N)))
    x_pad = jnp.pad(x, ((0, 0), (0, n_pad - N), (0, 0))).astype(jnp.float32)

    # ---------------- stage 1: h = x @ W over all bs*n_pad rows + e_src/e_dst ----------------
    rows = bs * n_pad
    tm, tkf = _stage1_tiles(rows, f_in, f_pad, budget)
    x2 = x_pad.reshape(rows, f_in)
    nkf = max(f_in // tkf, 1)

    h_flat, esrc, edst = pl.pallas_call(
        _h_kernel,
        out_shape=(jax.ShapeDtypeStruct((rows, f_pad), jnp.bfloat16),
                   jax.ShapeDtypeStruct((rows, 1), jnp.float32),
                   jax.ShapeDtypeStruct((rows, 1), jnp.float32)),
        grid_spec=pltpu.PrefetchScalarGridSpec(
            num_scalar_prefetch=0,
            grid=(rows // tm, nkf),
            in_specs=[pl.BlockSpec((tm, tkf), lambda i, k: (i, k)),
                      pl.BlockSpec((tkf, f_pad), lambda i, k: (k, 0)),
                      pl.BlockSpec((2, f_pad), lambda i, k: (0, 0))],
            out_specs=[pl.BlockSpec((tm, f_pad), lambda i, k: (i, 0)),
                       pl.BlockSpec((tm, 1), lambda i, k: (i, 0)),
                       pl.BlockSpec((tm, 1), lambda i, k: (i, 0))],
            scratch_shapes=[pltpu.VMEM((tm, f_pad), jnp.float32)],
        ),
        compiler_params=pltpu.CompilerParams(
            dimension_semantics=("parallel", "arbitrary"),
            vmem_limit_bytes=vmem_limit),
        cost_estimate=pl.CostEstimate(
            flops=2 * rows * f_in * f_pad + 4 * rows * f_pad,
            transcendentals=0,
            bytes_accessed=rows * f_in * 4 + f_in * f_pad * 2
                           + rows * f_pad * 2 + 2 * rows * 4),
    )(x2, w_pad, a_pair)

    h = h_flat.reshape(bs, n_pad, f_pad)
    e_src = esrc.reshape(bs, n_pad, 1)
    e_dst = edst.reshape(bs, 1, n_pad)        # same memory order -> free reshape

    # -------- stage 2: tiled masked attention (online softmax) + ELU --------
    bb, tq, tk = _stage2_tiles(bs, n_pad, f_pad, budget)
    nb, nq, nk = bs // bb, n_pad // tq, n_pad // tk

    out_pad = pl.pallas_call(
        _attn_kernel,
        out_shape=jax.ShapeDtypeStruct((bs, n_pad, f_pad), x.dtype),
        grid_spec=pltpu.PrefetchScalarGridSpec(
            num_scalar_prefetch=0,
            grid=(nb, nq, nk),
            in_specs=[
                pl.BlockSpec((bb, tk, f_pad), lambda b, qi, ki: (b, ki, 0)),  # h (keys)
                pl.BlockSpec((bb, tq, 1), lambda b, qi, ki: (b, qi, 0)),      # e_src
                pl.BlockSpec((bb, 1, tk), lambda b, qi, ki: (b, 0, ki)),      # e_dst
                pl.BlockSpec((tq, tk), lambda b, qi, ki: (qi, ki)),           # adj (int8)
            ],
            out_specs=pl.BlockSpec((bb, tq, f_pad), lambda b, qi, ki: (b, qi, 0)),
            scratch_shapes=[
                pltpu.VMEM((bb, tq, 1), jnp.float32),       # running max m
                pltpu.VMEM((bb, tq, 1), jnp.float32),       # running denominator l
                pltpu.VMEM((bb, tq, f_pad), jnp.float32),   # running numerator acc
            ],
        ),
        compiler_params=pltpu.CompilerParams(
            dimension_semantics=("parallel", "parallel", "arbitrary"),
            vmem_limit_bytes=vmem_limit),
        cost_estimate=pl.CostEstimate(
            flops=2 * bs * n_pad * n_pad * f_pad + 10 * bs * n_pad * n_pad,
            transcendentals=bs * n_pad * n_pad + bs * n_pad * (nk + 1),
            bytes_accessed=nb * n_pad * n_pad                      # adj, int8, once per (qi,ki)
                           + bs * nq * n_pad * f_pad * 2           # h keys, once per query tile
                           + bs * n_pad * 4 * (nq + nk)            # e_src / e_dst
                           + bs * n_pad * f_pad * 4),              # output writeback
    )(h, e_src, e_dst, adj_i8)

    return out_pad[:, :N, :f_out]


def _xavier_uniform(key, shape, gain):
    fan_in, fan_out = shape[0], shape[1]
    bound = gain * math.sqrt(6.0 / (fan_in + fan_out))
    return jax.random.uniform(key, shape, jnp.float32, -bound, bound)


def _reference(x, adj, W, a):
    """Pure-JAX f32 reference mirroring the PyTorch forward (eval mode)."""
    h = jnp.einsum("bnf,fo->bno", x, W)
    f_out = W.shape[1]
    e_src = jnp.einsum("bno,o->bn", h, a[:f_out, 0])
    e_dst = jnp.einsum("bno,o->bn", h, a[f_out:, 0])
    e = e_src[:, :, None] + e_dst[:, None, :]
    e = jnp.where(e > 0, e, ALPHA * e)
    att = jnp.where(adj[None] > 0, e, NEG_BIG)
    att = jax.nn.softmax(att, axis=-1)
    h_prime = jnp.einsum("bij,bjo->bio", att, h)
    return jax.nn.elu(h_prime)


if __name__ == "__main__":
    bs, N = 2, 16
    in_features, out_features = 16, 32

    key = jax.random.PRNGKey(0)
    k_w, k_a, k_x, k_adj = jax.random.split(key, 4)

    # Deterministic parameter init (xavier_uniform with gain=1.414, as in __init__)
    W = _xavier_uniform(k_w, (in_features, out_features), gain=1.414)
    a = _xavier_uniform(k_a, (2 * out_features, 1), gain=1.414)

    # Deterministic inputs
    x = jax.random.normal(k_x, (bs, N, in_features), dtype=jnp.float32)
    adj = (jax.random.uniform(k_adj, (N, N)) > 0.5).astype(jnp.float32)
    # make sure every node has at least one neighbor (itself)
    adj = jnp.maximum(adj, jnp.eye(N, dtype=jnp.float32))

    out = gat_forward(x, adj, W, a)
    out = jax.block_until_ready(out)

    ref = _reference(x, adj, W, a)
    assert out.shape == (bs, N, out_features)
    # bf16 matmuls with f32 accumulation + approx reciprocal -> modest tolerance.
    max_err = float(jnp.max(jnp.abs(out - ref)))
    assert jnp.allclose(out, ref, atol=5e-2, rtol=5e-2), (
        f"mismatch vs reference (max abs err {max_err})")

    print("KERNEL_OK")
</pallas_src>

<mosaic_0001>
module attributes {stable_mosaic.version = 11 : i64} {
  func.func @_h_kernel(%arg0: i32, %arg1: i32, %arg2: memref<128x16xf32, #tpu.memory_space<vmem>>, %arg3: memref<16x128xbf16, #tpu.memory_space<vmem>>, %arg4: memref<2x128xf32, #tpu.memory_space<vmem>>, %arg5: memref<128x128xbf16, #tpu.memory_space<vmem>>, %arg6: memref<128x1xf32, #tpu.memory_space<vmem>>, %arg7: memref<128x1xf32, #tpu.memory_space<vmem>>, %arg8: memref<128x128xf32, #tpu.memory_space<vmem>>) attributes {dimension_semantics = [#tpu.dimension_semantics<parallel>, #tpu.dimension_semantics<arbitrary>], iteration_bounds = array<i64: 2, 1>, scalar_prefetch = 0 : i64, scratch_operands = 1 : i64, tpu.core_type = #tpu.core_type<tc>, window_params = [{transform_indices = @transform_0, window_bounds = array<i64: 128, 16>}, {transform_indices = @transform_1, window_bounds = array<i64: 16, 128>}, {pipeline_mode = #tpu.pipeline_mode<synchronous>, transform_indices = @transform_2, window_bounds = array<i64: 2, 128>}, {transform_indices = @transform_3, window_bounds = array<i64: 128, 128>}, {transform_indices = @transform_4, window_bounds = array<i64: 128, 1>}, {transform_indices = @transform_5, window_bounds = array<i64: 128, 1>}]} {
    %c0_i32 = arith.constant 0 : i32
    %0 = arith.cmpi eq, %arg1, %c0_i32 : i32
    %1 = arith.extui %0 : i1 to i32
    %c0_i32_0 = arith.constant 0 : i32
    %2 = arith.cmpi ne, %1, %c0_i32_0 : i32
    scf.if %2 {
      %cst_10 = arith.constant 0.000000e+00 : f32
      %13 = vector.broadcast %cst_10 : f32 to vector<128x128xf32>
      %c0_11 = arith.constant 0 : index
      %c0_12 = arith.constant 0 : index
      %14 = vector.load %arg8[%c0_11, %c0_12] : memref<128x128xf32, #tpu.memory_space<vmem>>, vector<128x128xf32>
      tpu.vector_store %arg8[%c0_11, %c0_12], %13 {strides = array<i32>} : memref<128x128xf32, #tpu.memory_space<vmem>>, vector<128x128xf32>,
    } else {
    }
    %c0 = arith.constant 0 : index
    %c0_1 = arith.constant 0 : index
    %3 = vector.load %arg8[%c0, %c0_1] : memref<128x128xf32, #tpu.memory_space<vmem>>, vector<128x128xf32>
    %c0_2 = arith.constant 0 : index
    %c0_3 = arith.constant 0 : index
    %4 = vector.load %arg2[%c0_2, %c0_3] : memref<128x16xf32, #tpu.memory_space<vmem>>, vector<128x16xf32>
    %5 = arith.truncf %4 : vector<128x16xf32> to vector<128x16xbf16>
    %c0_4 = arith.constant 0 : index
    %c0_5 = arith.constant 0 : index
    %6 = vector.load %arg3[%c0_4, %c0_5] : memref<16x128xbf16, #tpu.memory_space<vmem>>, vector<16x128xbf16>
    %cst = arith.constant dense<0.000000e+00> : vector<128x128xf32>
    %7 = tpu.matmul %5, %6, %cst {dimension_numbers = #tpu.dot_dimension_numbers<[1], [0], [0], [1], [0, 0, 1, 1], [], []>} : vector<128x16xbf16>, vector<16x128xbf16>, vector<128x128xf32> -> vector<128x128xf32>
    %8 = arith.addf %3, %7 : vector<128x128xf32>
    %c0_6 = arith.constant 0 : index
    %c0_7 = arith.constant 0 : index
    %9 = vector.load %arg8[%c0_6, %c0_7] : memref<128x128xf32, #tpu.memory_space<vmem>>, vector<128x128xf32>
    tpu.vector_store %arg8[%c0_6, %c0_7], %8 {strides = array<i32>} : memref<128x128xf32, #tpu.memory_space<vmem>>, vector<128x128xf32>,
    %c0_i32_8 = arith.constant 0 : i32
    %10 = arith.cmpi eq, %arg1, %c0_i32_8 : i32
    %11 = arith.extui %10 : i1 to i32
    %c0_i32_9 = arith.constant 0 : i32
    %12 = arith.cmpi ne, %11, %c0_i32_9 : i32
    scf.if %12 {
      %c0_10 = arith.constant 0 : index
      %c0_11 = arith.constant 0 : index
      %13 = vector.load %arg8[%c0_10, %c0_11] : memref<128x128xf32, #tpu.memory_space<vmem>>, vector<128x128xf32>
      %14 = arith.truncf %13 : vector<128x128xf32> to vector<128x128xbf16>
      %c0_12 = arith.constant 0 : index
      %c0_13 = arith.constant 0 : index
      %15 = vector.load %arg5[%c0_12, %c0_13] : memref<128x128xbf16, #tpu.memory_space<vmem>>, vector<128x128xbf16>
      tpu.vector_store %arg5[%c0_12, %c0_13], %14 {strides = array<i32>} : memref<128x128xbf16, #tpu.memory_space<vmem>>, vector<128x128xbf16>,
      %c0_14 = arith.constant 0 : index
      %c0_15 = arith.constant 0 : index
      %16 = vector.load %arg4[%c0_14, %c0_15] : memref<2x128xf32, #tpu.memory_space<vmem>>, vector<2x128xf32>
      %17 = vector.extract_strided_slice %16 {offsets = [0, 0], sizes = [1, 128], strides = [1, 1]} : vector<2x128xf32> to vector<1x128xf32>
      %18 = vector.broadcast %17 : vector<1x128xf32> to vector<128x128xf32>
      %19 = arith.mulf %13, %18 : vector<128x128xf32>
      %cst_16 = arith.constant dense<0.000000e+00> : vector<128xf32>
      %20 = vector.multi_reduction <add>, %19, %cst_16 [1] : vector<128x128xf32> to vector<128xf32>
      %21 = vector.shape_cast %20 : vector<128xf32> to vector<128x1xf32>
      %c0_17 = arith.constant 0 : index
      %c0_18 = arith.constant 0 : index
      %22 = vector.load %arg6[%c0_17, %c0_18] : memref<128x1xf32, #tpu.memory_space<vmem>>, vector<128x1xf32>
      tpu.vector_store %arg6[%c0_17, %c0_18], %21 {strides = array<i32>} : memref<128x1xf32, #tpu.memory_space<vmem>>, vector<128x1xf32>,
      %23 = vector.extract_strided_slice %16 {offsets = [1, 0], sizes = [1, 128], strides = [1, 1]} : vector<2x128xf32> to vector<1x128xf32>
      %24 = vector.broadcast %23 : vector<1x128xf32> to vector<128x128xf32>
      %25 = arith.mulf %13, %24 : vector<128x128xf32>
      %cst_19 = arith.constant dense<0.000000e+00> : vector<128xf32>
      %26 = vector.multi_reduction <add>, %25, %cst_19 [1] : vector<128x128xf32> to vector<128xf32>
      %27 = vector.shape_cast %26 : vector<128xf32> to vector<128x1xf32>
      %c0_20 = arith.constant 0 : index
      %c0_21 = arith.constant 0 : index
      %28 = vector.load %arg7[%c0_20, %c0_21] : memref<128x1xf32, #tpu.memory_space<vmem>>, vector<128x1xf32>
      tpu.vector_store %arg7[%c0_20, %c0_21], %27 {strides = array<i32>} : memref<128x1xf32, #tpu.memory_space<vmem>>, vector<128x1xf32>,
    } else {
    }
    return
  }
  func.func @transform_0(%arg0: i32, %arg1: i32) -> (i32, i32) {
    %c0_i32 = arith.constant 0 : i32
    return %arg0, %arg1 : i32, i32
  }
  func.func @transform_1(%arg0: i32, %arg1: i32) -> (i32, i32) {
    %c0_i32 = arith.constant 0 : i32
    %c0_i32_0 = arith.constant 0 : i32
    return %arg1, %c0_i32 : i32, i32
  }
  func.func @transform_2(%arg0: i32, %arg1: i32) -> (i32, i32) {
    %c0_i32 = arith.constant 0 : i32
    %c0_i32_0 = arith.constant 0 : i32
    %c0_i32_1 = arith.constant 0 : i32
    return %c0_i32, %c0_i32_0 : i32, i32
  }
  func.func @transform_3(%arg0: i32, %arg1: i32) -> (i32, i32) {
    %c0_i32 = arith.constant 0 : i32
    %c0_i32_0 = arith.constant 0 : i32
    return %arg0, %c0_i32 : i32, i32
  }
  func.func @transform_4(%arg0: i32, %arg1: i32) -> (i32, i32) {
    %c0_i32 = arith.constant 0 : i32
    %c0_i32_0 = arith.constant 0 : i32
    return %arg0, %c0_i32 : i32, i32
  }
  func.func @transform_5(%arg0: i32, %arg1: i32) -> (i32, i32) {
    %c0_i32 = arith.constant 0 : i32
    %c0_i32_0 = arith.constant 0 : i32
    return %arg0, %c0_i32 : i32, i32
  }
}

</mosaic_0001>

<bundles_post_ra>
// kernel: tpu_custom_call.1
= control target key start
LH: loop header
LB: loop body
LE: loop exit
PB: predicated region body
PF: predicated region fallthrough
CT: control target
= control target key end

     0   :  { %11 = vsyncpa [#allocation4], 0  ;;  %s1498_s0 = inlined_call_operand.vmem [shape: f32[256,16], index: 0, kind: input, shape index: {}]   ;;  %s1499_s1 = inlined_call_operand.vmem [shape: bf16[16,128], index: 1, kind: input, shape index: {}]   ;;  %s1500_s2 = inlined_call_operand.vmem [shape: f32[2,128], index: 2, kind: input, shape index: {}]   ;;  %s1501_s3 = inlined_call_operand.hbm [shape: bf16[256,128], index: 3, kind: output, shape index: {0}]   ;;  %s1502_s4 = inlined_call_operand.vmem [shape: f32[256,1], index: 4, kind: output, shape index: {1}]   ;;  %s1503_s5 = inlined_call_operand.vmem [shape: f32[256,1], index: 5, kind: output, shape index: {2}]  }
   0x1   :  { %13 = vsyncpa [#allocation4 + $0x1], 0  ;;  %s1235_s18 = smov 0   ;;  %s1237_s19 = smov 0  }
   0x2   :  { %s1239_s20 = smov 0   ;;  %s1241_s21 = smov 0  }
   0x3   :  { %s1243_s22 = smov 0   ;;  %s1245_s23 = smov 0  }
   0x4 LB: > { %s928_s24 = sadd.s32 4294967295, %s1200_s23   ;;  %s929_s25 = sadd.s32 4294967294, %s1200_s23   ;;  %s1200_s23 = sphi %s1245_s23, %s19_s23   ;;  %s1196_s22 = sphi %s1243_s22, %s1510_s22   ;;  %s1192_s21 = sphi %s1241_s21, %s1509_s21   ;;  %s1188_s20 = sphi %s1239_s20, %s1508_s20   ;;  %s1184_s19 = sphi %s1237_s19, %s1507_s19   ;;  %s1180_s18 = sphi %s1235_s18, %s1506_s18  }
   0x5   : > { %s31_s26 = sadd.s32 1, %s1196_s22  ;;  %s113_s27 = sadd.s32 1, %s1188_s20 }
   0x6   : > { %p33_p0 = scmp.ge.s32.totalorder %s31_s26, 2  ;;  %p123_p1 = scmp.ne.s32.totalorder %s1188_s20, %s1184_s19 }
   0x7   : > { %p124_p2 = scmp.eq.s32.totalorder %s928_s24, 1  ;;  %p129_p3 = scmp.ne.s32.totalorder %s1184_s19, %s1180_s18 }
   0x8   : > { %s1512_s26 = smov (%p33_p0, %s31_s26), 0  ;;  %p130_p5 = scmp.eq.s32.totalorder %s929_s25, 1 }
   0x9   : > { %p1275_p4 = por %p124_p2, %p123_p1  ;;  %s110_s29 = ssub.s32 %s1196_s22, %s1512_s26 }
   0xa   : > { %p933_p6 = scmp.ge.s32.totalorder %s1200_s23, 1  ;;  %p111_p7 = scmp.eq.s32.totalorder %s110_s29, 0 }
   0xb   : > { %p1282_p8 = por %p130_p5, %p129_p3  ;;  %p224_p9 = scmp.lt.s32.totalorder %s1200_s23, 3 }
   0xc   : > { %s1288_s6 = scalar_select %p111_p7, %s1188_s20, %s113_s27  }
   0xd   : > { %p225_p10 = pnand %p933_p6, %p224_p9 }
   0xe   : > { %v1121_v0 = vld [vmem:[%s1499_s1] sm:$0xff] (!%p225_p10)   ;;  %s935_s9 = sshll.u32 (!%p225_p10), %s1192_s21, 4  ;;  %vm367_vm0 = vcmask (!%p225_p10), 130048   ;;  %v621_v25 = vlaneseq (!%p225_p10)  ;;  %s253_s16 = sand.u32 (!%p225_p10), 1, %s1184_s19  }
   0xf   : > { %228 = sbr.rel (%p225_p10) target bundleno = 447 (0x1bf), region = 32  ;;  %p271_p11 = scmp.lt.s32.totalorder (!%p225_p10), %s935_s9, 31  ;;  %1044 = vmatprep.subr.bf16.mxu0 (!%p225_p10), %v1121_v0  ;;  %1062 = vmatprep.subr.bf16.mxu1 (!%p225_p10), %v1121_v0  ;;  %v620_v28 = vld [vmem:[%s1500_s2] sm:$0x3] (!%p225_p10) }
  0x10   : > { %1045 = vmatpush3.bf16.msra.mxu0 (!%p225_p10), %v1121_v0  ;;  %1063 = vmatpush3.bf16.msra.mxu1 (!%p225_p10), %v1121_v0  ;;  %v622_v26 = vshrl.u32 (!%p225_p10), %v621_v25, 7  ;;  %s934_s17 = sshll.u32 (!%p225_p10), %s253_s16, 6  ;;  %s987_s25 = sshll.u32 (!%p225_p10), %s1192_s21, 10 }
  0x11   : > { %s1320_s24 = scalar_lea.vmem (!%p225_p10), [#allocation3], %s934_s17  ;;  %s1370_s8 = scalar_lea.hbm (!%p225_p10), %s1501_s3, %s987_s25 }
  0x12   : > { %v623_v27 = vsub.s32 (!%p225_p10), 0, %v622_v26  ;;  %v692_v30 = vsub.s32 (!%p225_p10), 1, %v622_v26  ;;  %s782_s27 = sshll.u32 (!%p225_p10), %s1320_s24, 4  ;;  %s1202_s21 = smov (!%p225_p10), [#allocation3]   ;;  %s1372_s27 = int_to_ptr.vmem [resolvable:$true] %s782_s27 }
  0x13   : > { %s1122_s11 = scalar_lea.vmem (!%p225_p10), %s1372_s27, 1024  ;;  %s1126_s12 = sshll.u32 (!%p225_p10), %s1202_s21, 4  ;;  %s1127_s12 = int_to_ptr.vmem [resolvable:$false] %s1126_s12 }
  0x14   : > { %v1312_v29 = vrot.slane (!%p225_p10), %v620_v28, %v623_v27  ;;  %v1318_v38 = vrot.slane (!%p225_p10), %v620_v28, %v692_v30  ;;  %p1123_p12 = scmp.ne.s32.totalorder (!%p225_p10), %s1372_s27, %s1122_s11  ;;  %p1129_p1 = scmp.lt.s32.totalorder (!%p225_p10), %s1372_s27, %s1127_s12 }
  0x16   : > { %s1514_s9 = smov (!%p271_p11, %s935_s9), 31  ;;  %p1124_p13 = pnand %p1123_p12, %p1275_p4 }
  0x17   : > { %s1294_s10 = sshll.u32 %s1514_s9, 3  ;;  %s1376_s9 = scalar_lea.sflag [#allocation4], %s253_s16 }
  0x18   : > { %s277_s13 = scalar_lea.vmem %s1498_s0, %s1294_s10  ;;  %p1125_p0 = pneg %p1124_p13 }
  0x19   : > { %v335_v1 = vld [vmem:[%s277_s13] sm:$0xff]  ;;  %v336_v2 = vld [vmem:[%s277_s13 + $0x8] sm:$0xff]  ;;  %v337_v6 = vld [vmem:[%s277_s13 + $0x10] sm:$0xff] }
  0x1a   : > { %v343_v3 = vld [vmem:[%s277_s13 + $0x40] sm:$0xff]  ;;  %v351_v4 = vpack.c.bf16 %v336_v2, %v335_v1  ;;  %v344_v5 = vld [vmem:[%s277_s13 + $0x48] sm:$0xff]  ;;  %v338_v7 = vld [vmem:[%s277_s13 + $0x18] sm:$0xff] }
  0x1b   : > { %v355_v8 = vpack.c.bf16 %v344_v5, %v343_v3  ;;  %v352_v9 = vpack.c.bf16 %v338_v7, %v337_v6  ;;  %v345_v10 = vld [vmem:[%s277_s13 + $0x50] sm:$0xff]  ;;  %v346_v11 = vld [vmem:[%s277_s13 + $0x58] sm:$0xff]  ;;  %v339_v12 = vld [vmem:[%s277_s13 + $0x20] sm:$0xff] }
  0x1c   : > { %1046 = vmatprep.mubr.msk.bf16.mxu0 %vm367_vm0, %v351_v4  ;;  %v356_v13 = vpack.c.bf16 %v346_v11, %v345_v10  ;;  %v340_v14 = vld [vmem:[%s277_s13 + $0x28] sm:$0xff]  ;;  %v347_v16 = vld [vmem:[%s277_s13 + $0x60] sm:$0xff]  ;;  %v341_v18 = vld [vmem:[%s277_s13 + $0x30] sm:$0xff] }
  0x1d   : > { %1054 = vmatprep.mubr.msk.bf16.mxu1 %vm367_vm0, %v355_v8  ;;  %1047 = vmatmul.mubr.msk.bf16.vlgmr.msra.gmra.mrb[0].mxu0 %vm367_vm0, %v352_v9  ;;  %v353_v15 = vpack.c.bf16 %v340_v14, %v339_v12  ;;  %v348_v17 = vld [vmem:[%s277_s13 + $0x68] sm:$0xff]  ;;  %v342_v19 = vld [vmem:[%s277_s13 + $0x38] sm:$0xff]  ;;  %v349_v21 = vld [vmem:[%s277_s13 + $0x70] sm:$0xff] }
  0x1e   : > { %1055 = vmatmul.mubr.msk.bf16.vlgmr.msra.gmra.mrb[0].mxu1 %vm367_vm0, %v356_v13  ;;  %v357_v20 = vpack.c.bf16 %v348_v17, %v347_v16  ;;  %v350_v22 = vld [vmem:[%s277_s13 + $0x78] sm:$0xff]  ;;  %v354_v23 = vpack.c.bf16 %v342_v19, %v341_v18  ;;  %s1128_s13 = scalar_lea.vmem %s1127_s12, 2048 }
  0x1f   : > { %1050 = vmatprep.mubr.msk.bf16.mxu0 %vm367_vm0, %v353_v15  ;;  %v358_v24 = vpack.c.bf16 %v350_v22, %v349_v21  ;;  %p1130_p2 = scmp.lt.s32.totalorder %s1128_s13, %s1122_s11 }
  0x20   : > { %1058 = vmatprep.mubr.msk.bf16.mxu1 %vm367_vm0, %v357_v20 }
  0x21   : > { %p1131_p3 = por %p1130_p2, %p1129_p1 }
  0x23   : > { %p1132_p5 = pnand %p1131_p3, %p1125_p0 }
  0x25   : > { %1051 = vmatmul.mubr.msk.bf16.gmra.mrb[4].mxu0 %vm367_vm0, %v354_v23 }
  0x26   : > { %1059 = vmatmul.mubr.msk.bf16.gmra.mrb[4].mxu1 %vm367_vm0, %v358_v24 }
  0xf0   : > { %v1048_v31 = vpop.f32.mrb[0].mxu0 }
  0xf1   : > { %v1056_v32 = vpop.f32.mrb[0].mxu1  ;;  %v426_v33 = vpop.f32.mrb[1].mxu0  ;;  %v627_v34 = vmul.f32 %v1048_v31, %v1312_v29  ;;  %v696_v47 = vmul.f32 %v1048_v31, %v1318_v38 }
  0xf2   : > { %v458_v35 = vpop.f32.mrb[1].mxu1  ;;  %v1049_v36 = vpop.f32.mrb[2].mxu0  ;;  %v635_v37 = vmul.f32 %v1056_v32, %v1312_v29  ;;  %v704_v52 = vmul.f32 %v1056_v32, %v1318_v38  ;;  %v625_v63 = vmul.f32 %v1312_v29, %v426_v33  ;;  %v694_v3 = vmul.f32 %v1318_v38, %v426_v33 }
  0xf3   : > { %v996_v39 = vpack.c.bf16 %v1049_v36, %v1048_v31  ;;  %v1057_v40 = vpop.f32.mrb[2].mxu1  ;;  %645 = vadd.xlane.f32.xlu1 %v627_v34  ;;  %v429_v41 = vpop.f32.mrb[3].mxu0  ;;  %v628_v46 = vmul.f32 %v1049_v36, %v1312_v29  ;;  %v697_v61 = vmul.f32 %v1049_v36, %v1318_v38  ;;  %v633_v1 = vmul.f32 %v1312_v29, %v458_v35 }
  0xf4   : > { %v1016_v42 = vpack.c.bf16 %v1057_v40, %v1056_v32  ;;  %661 = vadd.xlane.f32.xlu0 %v635_v37  ;;  %v461_v43 = vpop.f32.mrb[3].mxu1  ;;  %v991_v44 = vpack.c.bf16 %v429_v41, %v426_v33  ;;  %v636_v49 = vmul.f32 %v1057_v40, %v1312_v29  ;;  %v705_v0 = vmul.f32 %v1057_v40, %v1318_v38 }
  0xf5   : > { %1028 = vst [vmem:[%s1320_s24 + $0x8] sm:$0xff] %v996_v39   ;;  %v1011_v45 = vpack.c.bf16 %v461_v43, %v458_v35  ;;  %v634_v2 = vmul.f32 %v1312_v29, %v461_v43  ;;  %v695_v4 = vmul.f32 %v1318_v38, %v429_v41  ;;  %v702_v5 = vmul.f32 %v1318_v38, %v458_v35 }
  0xf6   : > { %1032 = vst [vmem:[%s1320_s24 + $0x28] sm:$0xff] %v1016_v42   ;;  %992 = vst [vmem:[%s1320_s24] sm:$0xff] %v991_v44   ;;  %v703_v6 = vmul.f32 %v1318_v38, %v461_v43  ;;  %v626_v7 = vmul.f32 %v1312_v29, %v429_v41 }
  0xf7   : > { %1031 = vst [vmem:[%s1320_s24 + $0x20] sm:$0xff] %v1011_v45   ;;  %647 = vadd.xlane.f32.xlu1 %v628_v46 }
  0xf8   : > { %714 = vadd.xlane.f32.xlu0 %v696_v47  ;;  %v1052_v48 = vpop.f32.mrb[4].mxu0 }
  0xf9   : > { %v442_v50 = vpop.f32.mrb[5].mxu0  ;;  %v1329_v51 = vpop.f32.mrb[4].mxu1  ;;  %v631_v9 = vmul.f32 %v1052_v48, %v1312_v29  ;;  %v700_v13 = vmul.f32 %v1052_v48, %v1318_v38 }
  0xfa   : > { %v1053_v53 = vpop.f32.mrb[6].mxu0  ;;  %v474_v54 = vpop.f32.mrb[5].mxu1  ;;  %v639_v11 = vmul.f32 %v1329_v51, %v1312_v29  ;;  %v629_v15 = vmul.f32 %v1312_v29, %v442_v50  ;;  %v698_v19 = vmul.f32 %v1318_v38, %v442_v50  ;;  %v708_v23 = vmul.f32 %v1329_v51, %v1318_v38 }
  0xfb   : > { %663 = vadd.xlane.f32.xlu1 %v636_v49  ;;  %v1006_v55 = vpack.c.bf16 %v1053_v53, %v1052_v48  ;;  %v445_v56 = vpop.f32.mrb[7].mxu0  ;;  %v1061_v57 = vpop.f32.mrb[6].mxu1  ;;  %v632_v8 = vmul.f32 %v1053_v53, %v1312_v29  ;;  %v701_v12 = vmul.f32 %v1053_v53, %v1318_v38  ;;  %v637_v17 = vmul.f32 %v1312_v29, %v474_v54 }
  0xfc   : > { %730 = vadd.xlane.f32.xlu0 %v704_v52  ;;  %v1001_v58 = vpack.c.bf16 %v445_v56, %v442_v50  ;;  %v1026_v59 = vpack.c.bf16 %v1061_v57, %v1329_v51  ;;  %v477_v60 = vpop.f32.mrb[7].mxu1  ;;  %v640_v10 = vmul.f32 %v1061_v57, %v1312_v29  ;;  %v630_v14 = vmul.f32 %v1312_v29, %v445_v56 }
  0xfd   : > { %1030 = vst [vmem:[%s1320_s24 + $0x18] sm:$0xff] %v1006_v55   ;;  %v1021_v62 = vpack.c.bf16 %v477_v60, %v474_v54  ;;  %v638_v16 = vmul.f32 %v1312_v29, %v477_v60  ;;  %v699_v18 = vmul.f32 %v1318_v38, %v445_v56  ;;  %v707_v20 = vmul.f32 %v1318_v38, %v477_v60 }
  0xfe   : > { %1029 = vst [vmem:[%s1320_s24 + $0x10] sm:$0xff] %v1001_v58   ;;  %1034 = vst [vmem:[%s1320_s24 + $0x38] sm:$0xff] %v1026_v59   ;;  %v706_v21 = vmul.f32 %v1318_v38, %v474_v54  ;;  %v709_v22 = vmul.f32 %v1061_v57, %v1318_v38 }
  0xff   : > { %716 = vadd.xlane.f32.xlu1 %v697_v61  ;;  %1033 = vst [vmem:[%s1320_s24 + $0x30] sm:$0xff] %v1021_v62  }
 0x100   : > { %641 = vadd.xlane.f32.xlu0 %v625_v63 }
 0x103   : > { %732 = vadd.xlane.f32.xlu1 %v705_v0 }
 0x104   : > { %657 = vadd.xlane.f32.xlu0 %v633_v1 }
 0x107   : > { %659 = vadd.xlane.f32.xlu1 %v634_v2 }
 0x108   : > { %710 = vadd.xlane.f32.xlu0 %v694_v3 }
 0x10b   : > { %712 = vadd.xlane.f32.xlu1 %v695_v4 }
 0x10c   : > { %726 = vadd.xlane.f32.xlu0 %v702_v5 }
 0x10f   : > { %728 = vadd.xlane.f32.xlu1 %v703_v6 }
 0x110   : > { %643 = vadd.xlane.f32.xlu0 %v626_v7 }
 0x113   : > { %655 = vadd.xlane.f32.xlu1 %v632_v8 }
 0x114   : > { %653 = vadd.xlane.f32.xlu0 %v631_v9 }
 0x117   : > { %671 = vadd.xlane.f32.xlu1 %v640_v10 }
 0x118   : > { %669 = vadd.xlane.f32.xlu0 %v639_v11 }
 0x11b   : > { %724 = vadd.xlane.f32.xlu1 %v701_v12 }
 0x11c   : > { %722 = vadd.xlane.f32.xlu0 %v700_v13 }
 0x11f   : > { %651 = vadd.xlane.f32.xlu1 %v630_v14 }
 0x120   : > { %649 = vadd.xlane.f32.xlu0 %v629_v15 }
 0x123   : > { %667 = vadd.xlane.f32.xlu1 %v638_v16 }
 0x124   : > { %665 = vadd.xlane.f32.xlu0 %v637_v17 }
 0x127   : > { %720 = vadd.xlane.f32.xlu1 %v699_v18 }
 0x128   : > { %718 = vadd.xlane.f32.xlu0 %v698_v19 }
 0x12b   : > { %736 = vadd.xlane.f32.xlu1 %v707_v20 }
 0x12c   : > { %734 = vadd.xlane.f32.xlu0 %v706_v21 }
 0x12f   : > { %740 = vadd.xlane.f32.xlu1 %v709_v22 }
 0x130   : > { %738 = vadd.xlane.f32.xlu0 %v708_v23 }
 0x131   : > { %1135 = shalt.err (!%p1132_p5)
}
 0x132   : > { %s1136_s14 = scalar_lea.hbm %s1370_s8, 1024  ;;  %s1140_s17 = scalar_lea.hbm %s1501_s3, 2048 }
 0x133   : > { %p1137_p6 = scmp.ne.s32.totalorder %s1370_s8, %s1136_s14  ;;  %p1141_p10 = scmp.lt.u32.totalorder %s1370_s8, %s1501_s3 }
 0x134   : > { %p1142_p11 = scmp.lt.u32.totalorder %s1140_s17, %s1136_s14  ;;  %p1144_p13 = scmp.lt.u32.totalorder %s1136_s14, %s1370_s8 }
 0x135   : > { %p1138_p7 = pnand %p1137_p6, %p1275_p4 }
 0x136   : > { %p1143_p12 = por %p1142_p11, %p1141_p10 }
 0x137   : > { %p1139_p9 = pneg %p1138_p7 }
 0x138   : > { %p1145_p0 = por %p1144_p13, %p1143_p12 }
 0x13a   : > { %p1146_p1 = pnand %p1145_p0, %p1139_p9 }
 0x13c   : > { %1149 = shalt.err (!%p1146_p1)
}
 0x13d   : > { %s1203_s29 = smov 64   ;;  %s1204_s7 = smov 4   ;;  %vm673_vm1 = vcmask 7168  }
 0x13e   : > { %1064 = dma.vmem_to_hbm [thread:$0]  (%p1275_p4), %s1372_s27, 1024, %s1370_s8, %s1376_s9, %s1203_s29, %s1203_s29, %s1204_s7  }
 0x13f   : > { %s1404_s12 = scalar_lea.vmem %s1502_s4, %s1294_s10  ;;  %s1414_s27 = scalar_lea.vmem %s1503_s5, %s1294_s10 }
 0x180   : > { %v646_v24 = vpop.xlane.xlu1 %645 }
 0x181   : > { %v662_v25 = vpop.xlane.xlu0 %661  ;;  %676 = vst.msk [vmem:[%s1404_s12 + $0x10] sm:$0xff] %vm673_vm1, %v646_v24 }
 0x182   : > { %684 = vst.msk [vmem:[%s1404_s12 + $0x50] sm:$0xff] %vm673_vm1, %v662_v25 }
 0x184   : > { %v648_v26 = vpop.xlane.xlu1 %647 }
 0x185   : > { %v715_v27 = vpop.xlane.xlu0 %714  ;;  %677 = vst.msk [vmem:[%s1404_s12 + $0x18] sm:$0xff] %vm673_vm1, %v648_v26 }
 0x186   : > { %744 = vst.msk [vmem:[%s1414_s27 + $0x10] sm:$0xff] %vm673_vm1, %v715_v27 }
 0x188   : > { %v664_v28 = vpop.xlane.xlu1 %663 }
 0x189   : > { %v731_v29 = vpop.xlane.xlu0 %730  ;;  %685 = vst.msk [vmem:[%s1404_s12 + $0x58] sm:$0xff] %vm673_vm1, %v664_v28 }
 0x18a   : > { %752 = vst.msk [vmem:[%s1414_s27 + $0x50] sm:$0xff] %vm673_vm1, %v731_v29 }
 0x18c   : > { %v717_v30 = vpop.xlane.xlu1 %716 }
 0x18d   : > { %v642_v31 = vpop.xlane.xlu0 %641  ;;  %745 = vst.msk [vmem:[%s1414_s27 + $0x18] sm:$0xff] %vm673_vm1, %v717_v30 }
 0x18e   : > { %674 = vst.msk [vmem:[%s1404_s12] sm:$0xff] %vm673_vm1, %v642_v31 }
 0x190   : > { %v733_v32 = vpop.xlane.xlu1 %732 }
 0x191   : > { %v658_v33 = vpop.xlane.xlu0 %657  ;;  %753 = vst.msk [vmem:[%s1414_s27 + $0x58] sm:$0xff] %vm673_vm1, %v733_v32 }
 0x192   : > { %682 = vst.msk [vmem:[%s1404_s12 + $0x40] sm:$0xff] %vm673_vm1, %v658_v33 }
 0x194   : > { %v660_v34 = vpop.xlane.xlu1 %659 }
 0x195   : > { %v711_v35 = vpop.xlane.xlu0 %710  ;;  %683 = vst.msk [vmem:[%s1404_s12 + $0x48] sm:$0xff] %vm673_vm1, %v660_v34 }
 0x196   : > { %742 = vst.msk [vmem:[%s1414_s27] sm:$0xff] %vm673_vm1, %v711_v35 }
 0x198   : > { %v713_v36 = vpop.xlane.xlu1 %712 }
 0x199   : > { %v727_v37 = vpop.xlane.xlu0 %726  ;;  %743 = vst.msk [vmem:[%s1414_s27 + $0x8] sm:$0xff] %vm673_vm1, %v713_v36 }
 0x19a   : > { %750 = vst.msk [vmem:[%s1414_s27 + $0x40] sm:$0xff] %vm673_vm1, %v727_v37 }
 0x19c   : > { %v729_v38 = vpop.xlane.xlu1 %728 }
 0x19d   : > { %751 = vst.msk [vmem:[%s1414_s27 + $0x48] sm:$0xff] %vm673_vm1, %v729_v38  ;;  %v644_v39 = vpop.xlane.xlu0 %643 }
 0x19e   : > { %675 = vst.msk [vmem:[%s1404_s12 + $0x8] sm:$0xff] %vm673_vm1, %v644_v39 }
 0x1a0   : > { %v656_v40 = vpop.xlane.xlu1 %655 }
 0x1a1   : > { %v654_v41 = vpop.xlane.xlu0 %653  ;;  %681 = vst.msk [vmem:[%s1404_s12 + $0x38] sm:$0xff] %vm673_vm1, %v656_v40 }
 0x1a2   : > { %680 = vst.msk [vmem:[%s1404_s12 + $0x30] sm:$0xff] %vm673_vm1, %v654_v41 }
 0x1a4   : > { %v672_v42 = vpop.xlane.xlu1 %671 }
 0x1a5   : > { %v670_v43 = vpop.xlane.xlu0 %669  ;;  %689 = vst.msk [vmem:[%s1404_s12 + $0x78] sm:$0xff] %vm673_vm1, %v672_v42 }
 0x1a6   : > { %688 = vst.msk [vmem:[%s1404_s12 + $0x70] sm:$0xff] %vm673_vm1, %v670_v43 }
 0x1a8   : > { %v725_v44 = vpop.xlane.xlu1 %724 }
 0x1a9   : > { %v723_v45 = vpop.xlane.xlu0 %722  ;;  %749 = vst.msk [vmem:[%s1414_s27 + $0x38] sm:$0xff] %vm673_vm1, %v725_v44 }
 0x1aa   : > { %748 = vst.msk [vmem:[%s1414_s27 + $0x30] sm:$0xff] %vm673_vm1, %v723_v45 }
 0x1ac   : > { %v652_v46 = vpop.xlane.xlu1 %651 }
 0x1ad   : > { %v650_v47 = vpop.xlane.xlu0 %649  ;;  %679 = vst.msk [vmem:[%s1404_s12 + $0x28] sm:$0xff] %vm673_vm1, %v652_v46 }
 0x1ae   : > { %678 = vst.msk [vmem:[%s1404_s12 + $0x20] sm:$0xff] %vm673_vm1, %v650_v47 }
 0x1b0   : > { %v668_v48 = vpop.xlane.xlu1 %667 }
 0x1b1   : > { %v666_v49 = vpop.xlane.xlu0 %665  ;;  %687 = vst.msk [vmem:[%s1404_s12 + $0x68] sm:$0xff] %vm673_vm1, %v668_v48 }
 0x1b2   : > { %686 = vst.msk [vmem:[%s1404_s12 + $0x60] sm:$0xff] %vm673_vm1, %v666_v49 }
 0x1b4   : > { %v721_v50 = vpop.xlane.xlu1 %720 }
 0x1b5   : > { %v719_v51 = vpop.xlane.xlu0 %718  ;;  %747 = vst.msk [vmem:[%s1414_s27 + $0x28] sm:$0xff] %vm673_vm1, %v721_v50 }
 0x1b6   : > { %746 = vst.msk [vmem:[%s1414_s27 + $0x20] sm:$0xff] %vm673_vm1, %v719_v51 }
 0x1b8   : > { %v737_v52 = vpop.xlane.xlu1 %736 }
 0x1b9   : > { %v735_v53 = vpop.xlane.xlu0 %734  ;;  %755 = vst.msk [vmem:[%s1414_s27 + $0x68] sm:$0xff] %vm673_vm1, %v737_v52 }
 0x1ba   : > { %754 = vst.msk [vmem:[%s1414_s27 + $0x60] sm:$0xff] %vm673_vm1, %v735_v53 }
 0x1bc   : > { %v741_v54 = vpop.xlane.xlu1 %740 }
 0x1bd   : > { %v739_v55 = vpop.xlane.xlu0 %738  ;;  %757 = vst.msk [vmem:[%s1414_s27 + $0x78] sm:$0xff] %vm673_vm1, %v741_v54 }
 0x1be   : > { %756 = vst.msk [vmem:[%s1414_s27 + $0x70] sm:$0xff] %vm673_vm1, %v739_v55 }
 0x1bf PF: > { %p1070_p4 = scmp.ge.s32.totalorder %s1200_s23, 2  ;;  %s805_s10 = sand.u32 1, %s1180_s18  }
 0x1c0   : > { %s806_s8 = scalar_lea.sflag [#allocation4], %s805_s10 }
 0x1c1   : > { %p1067_p2 = pnand %p1070_p4, %p1282_p8 }
 0x1c3   : > { %1175 = dma.done.wait (!%p1067_p2), %s806_s8, 1024  }
 0x1c4   : > { %1177 = vsyncadd (!%p1067_p2), %s806_s8, 4294966272  ;;  %s19_s23 = sadd.s32 1, %s1200_s23   ;;  %s1506_s18 = smov %s1184_s19 }
 0x1c5   : > { %p16_p3 = scmp.ge.s32.totalorder %s19_s23, 4   ;;  %s1507_s19 = smov %s1188_s20 }
 0x1c6   : > { %s1508_s20 = smov %s1288_s6  ;;  %s1509_s21 = smov %s1196_s22 }
 0x1c7   : > { %s1510_s22 = smov %s1512_s26  ;;  %18 = sbr.rel (!%p16_p3) target bundleno = 4 (0x4), region = 102 }
 0x1ce   :  { %827 = vsyncpa [#allocation4], 1 }
 0x1cf   :  { %829 = vsyncpa [#allocation4 + $0x1], 1 }

</bundles_post_ra>
